<compile_context>
chip_gen: v7x
topology: tpu7x:2x2x1
jax: 0.10.0
libtpu: 0.0.40
codegen_flags: <defaults>
</compile_context>

<pallas_src>
import functools

import jax
import jax.numpy as jnp
from jax.experimental import pallas as pl
from jax.experimental.pallas import tpu as pltpu


def _diffconv_kernel(self_ref, a_ref, p_ref, o_ref, *, activation):
    """Grid step (r, k, g): o[row tile r] += A_g[r, k-tile] @ proj_g[k-tile]."""
    k = pl.program_id(1)
    g = pl.program_id(2)

    @pl.when((k == 0) & (g == 0))
    def _init():
        # Self-connection term merger[G-1] * (x @ P_{G-1}) seeds the accumulator.
        o_ref[...] = self_ref[...].astype(jnp.float32)

    o_ref[...] += jnp.dot(a_ref[0], p_ref[0], preferred_element_type=jnp.float32)

    @pl.when((k == pl.num_programs(1) - 1) & (g == pl.num_programs(2) - 1))
    def _finalize():
        y = o_ref[...]
        if activation == "relu":
            y = jnp.maximum(y, 0.0)
        elif activation == "tanh":
            y = jnp.tanh(y)
        o_ref[...] = y


def _pick_tile(n, candidates):
    for c in candidates:
        if c <= n and n % c == 0:
            return c
    return n  # full-dim escape hatch (always a legal block size)


def _apply_activation(y, activation):
    if activation == "relu":
        return jnp.maximum(y, 0.0)
    if activation == "tanh":
        return jnp.tanh(y)
    return y


def diffconv_layer(x, diffusion_ops, proj, merger, activation,
                   compute_dtype=jnp.bfloat16):
    """One DiffConv layer:  sum_g merger[g] * A_g @ (x @ P_g)   (+ activation).

    x: [N, F]; diffusion_ops: [G-1, N, N] (row-stochastic k-hop operators,
    the self-connection is handled separately); proj: [G, F, Q] with the LAST
    slice being the self-connection weights; merger: [G].
    """
    N, _ = x.shape
    G_all, _, Q = proj.shape
    G_diff = G_all - 1

    xf = x.astype(jnp.float32)
    # Fold the merger coefficients into the projection weights, then project
    # once per layer (K = F matmul; left to XLA -- it is tiny compared to the
    # N x N diffusion matmuls that the kernel streams).
    p_scaled = merger[:, None, None].astype(jnp.float32) * proj.astype(jnp.float32)
    self_term = xf @ p_scaled[G_diff]                                 # [N, Q]
    if G_diff == 0:
        return _apply_activation(self_term, activation)
    proj_diff = jnp.einsum("nf,gfq->gnq", xf, p_scaled[:G_diff])      # [G-1, N, Q]

    # Stream the large operands in (by default) bf16; accumulate in f32.
    adj_c = diffusion_ops.astype(compute_dtype)
    proj_c = proj_diff.astype(compute_dtype)

    tm = _pick_tile(N, (512, 384, 256, 128, 64, 32, 16, 8))   # output-row tile
    tk = _pick_tile(N, (1024, 512, 256, 128))                 # reduction tile
    grid = (N // tm, N // tk, G_diff)

    kernel = functools.partial(_diffconv_kernel, activation=activation)
    # NOTE: with Q << 128 the [tm, Q] output store is lane-masked; acceptable
    # here because the accumulator stays VMEM-resident across the whole (k, g)
    # reduction and is written back to HBM only once per row tile.
    return pl.pallas_call(
        kernel,
        out_shape=jax.ShapeDtypeStruct((N, Q), jnp.float32),
        grid_spec=pltpu.PrefetchScalarGridSpec(
            num_scalar_prefetch=0,
            grid=grid,
            in_specs=[
                pl.BlockSpec((tm, Q), lambda r, k, g: (r, 0)),         # self term
                pl.BlockSpec((1, tm, tk), lambda r, k, g: (g, r, k)),  # A_g tile
                pl.BlockSpec((1, tk, Q), lambda r, k, g: (g, k, 0)),   # proj_g tile
            ],
            out_specs=pl.BlockSpec((tm, Q), lambda r, k, g: (r, 0)),
        ),
        compiler_params=pltpu.CompilerParams(
            dimension_semantics=("parallel", "arbitrary", "arbitrary")),
    )(self_term, adj_c, proj_c)


class MacroToMesoEncoderPallas:
    """JAX/Pallas port of MacroToMesoEncoder with spatial_conv_type='diffconv'."""

    def __init__(self, d_features, Q_mesoscale, num_layers=1, k=2,
                 is_SGRNN=False, key=jax.random.PRNGKey(0),
                 compute_dtype=jnp.bfloat16):
        # TODO(synk): spatial_conv_type='gaan' (GatedGAT) branch not implemented.
        self.d_features = d_features
        self.Q_mesoscale = Q_mesoscale
        self.num_layers = num_layers
        self.is_SGRNN = is_SGRNN
        self.compute_dtype = compute_dtype
        self.num_graphs = 2 * k - 2            # in-graph hops + out-graph hops
        G = self.num_graphs + 1                # + identity (self connection)

        self.proj_weights = []                 # per layer: [G, in_dim, Q]
        self.mergers = []                      # per layer: [G]
        for i in range(num_layers):
            in_dim = d_features if i == 0 else Q_mesoscale
            key, k1, k2 = jax.random.split(key, 3)
            bound = 1.0 / jnp.sqrt(in_dim)
            w = jax.random.uniform(k1, (G, in_dim, Q_mesoscale),
                                   minval=-bound, maxval=bound, dtype=jnp.float32)
            m = jax.random.normal(k2, (G,), dtype=jnp.float32)
            self.proj_weights.append(w)
            self.mergers.append(m)

    def __call__(self, diffusion_ops, macro_features):
        """diffusion_ops: [num_graphs, N, N] dense transition matrices;
        macro_features: [N, d]  ->  returns [N, Q]."""
        x = macro_features.astype(jnp.float32)
        for i in range(self.num_layers):
            last = i == self.num_layers - 1
            act = "tanh" if not last else ("none" if self.is_SGRNN else "relu")
            x = diffconv_layer(x, diffusion_ops, self.proj_weights[i],
                               self.mergers[i], act,
                               compute_dtype=self.compute_dtype)
        return x


def _reference(diffusion_ops, x, enc):
    """Plain-JAX f32 reference of the same math (for correctness checking)."""
    N = x.shape[0]
    adj = jnp.concatenate(
        [diffusion_ops, jnp.eye(N, dtype=jnp.float32)[None]], axis=0)
    y = x.astype(jnp.float32)
    for i in range(enc.num_layers):
        terms = jnp.einsum("gnm,gmq->gnq", adj,
                           jnp.einsum("nf,gfq->gnq", y, enc.proj_weights[i]))
        y = jnp.einsum("g,gnq->nq", enc.mergers[i], terms)
        if i < enc.num_layers - 1:
            y = jnp.tanh(y)
    if not enc.is_SGRNN:
        y = jnp.maximum(y, 0.0)
    return y


if __name__ == "__main__":
    key = jax.random.PRNGKey(0)
    k_feat, k_adj, k_param, k_param2 = jax.random.split(key, 4)

    N = 16            # nodes
    d_features = 4    # macroscale feature dim
    Q_mesoscale = 8   # mesoscale distribution size
    k_hops = 2        # diffusion order -> 2*k-2 = 2 diffusion graphs

    # Macroscale node features [N, d].
    macro_features = jax.random.normal(k_feat, (N, d_features), dtype=jnp.float32)

    # Random weighted digraph -> row-normalized in/out diffusion operators.
    raw = jax.random.uniform(k_adj, (N, N), dtype=jnp.float32)
    raw = raw * (raw > 0.6)                                           # sparsify
    out_trans = raw / (raw.sum(axis=1, keepdims=True) + 1e-6)         # D_out^-1 A
    in_trans = raw.T / (raw.T.sum(axis=1, keepdims=True) + 1e-6)      # D_in^-1 A^T
    diffusion_ops = jnp.stack([in_trans, out_trans], axis=0)          # [2, N, N]

    # --- single layer, f32 streaming (tight tolerance) ---
    enc = MacroToMesoEncoderPallas(d_features, Q_mesoscale, num_layers=1,
                                   k=k_hops, is_SGRNN=False, key=k_param,
                                   compute_dtype=jnp.float32)
    meso = jax.block_until_ready(enc(diffusion_ops, macro_features))
    ref = _reference(diffusion_ops, macro_features, enc)
    assert meso.shape == (N, Q_mesoscale)
    assert jnp.allclose(meso, ref, atol=1e-4, rtol=1e-4), "f32 mismatch vs reference"

    # --- same weights, bf16 streaming / f32 accumulation (loose tolerance) ---
    enc.compute_dtype = jnp.bfloat16
    meso_bf16 = jax.block_until_ready(enc(diffusion_ops, macro_features))
    assert jnp.allclose(meso_bf16, ref, atol=5e-2, rtol=5e-2), \
        "bf16 mismatch vs reference"

    # --- two layers (tanh between layers, relu at the end), f32 streaming ---
    enc2 = MacroToMesoEncoderPallas(d_features, Q_mesoscale, num_layers=2,
                                    k=k_hops, is_SGRNN=False, key=k_param2,
                                    compute_dtype=jnp.float32)
    meso2 = jax.block_until_ready(enc2(diffusion_ops, macro_features))
    ref2 = _reference(diffusion_ops, macro_features, enc2)
    assert jnp.allclose(meso2, ref2, atol=1e-4, rtol=1e-4), \
        "2-layer mismatch vs reference"

    print("KERNEL_OK")
</pallas_src>

<mosaic_0001>
module attributes {stable_mosaic.version = 11 : i64} {
  func.func @_diffconv_kernel(%arg0: i32, %arg1: i32, %arg2: i32, %arg3: memref<16x8xf32, #tpu.memory_space<vmem>>, %arg4: memref<1x16x16xf32, #tpu.memory_space<vmem>>, %arg5: memref<1x16x8xf32, #tpu.memory_space<vmem>>, %arg6: memref<16x8xf32, #tpu.memory_space<vmem>>) attributes {dimension_semantics = [#tpu.dimension_semantics<parallel>, #tpu.dimension_semantics<arbitrary>, #tpu.dimension_semantics<arbitrary>], iteration_bounds = array<i64: 1, 1, 2>, scalar_prefetch = 0 : i64, scratch_operands = 0 : i64, tpu.core_type = #tpu.core_type<tc>, window_params = [{transform_indices = @transform_0, window_bounds = array<i64: 16, 8>}, {transform_indices = @transform_1, window_bounds = array<i64: 1, 16, 16>}, {transform_indices = @transform_2, window_bounds = array<i64: 1, 16, 8>}, {transform_indices = @transform_3, window_bounds = array<i64: 16, 8>}]} {
    %c0_i32 = arith.constant 0 : i32
    %0 = arith.cmpi eq, %arg1, %c0_i32 : i32
    %c0_i32_0 = arith.constant 0 : i32
    %1 = arith.cmpi eq, %arg2, %c0_i32_0 : i32
    %2 = arith.andi %0, %1 : i1
    %3 = arith.extui %2 : i1 to i32
    %c0_i32_1 = arith.constant 0 : i32
    %4 = arith.cmpi ne, %3, %c0_i32_1 : i32
    scf.if %4 {
      %c0_13 = arith.constant 0 : index
      %c0_14 = arith.constant 0 : index
      %18 = vector.load %arg3[%c0_13, %c0_14] : memref<16x8xf32, #tpu.memory_space<vmem>>, vector<16x8xf32>
      %c0_15 = arith.constant 0 : index
      %c0_16 = arith.constant 0 : index
      %19 = vector.load %arg6[%c0_15, %c0_16] : memref<16x8xf32, #tpu.memory_space<vmem>>, vector<16x8xf32>
      tpu.vector_store %arg6[%c0_15, %c0_16], %18 {strides = array<i32>} : memref<16x8xf32, #tpu.memory_space<vmem>>, vector<16x8xf32>,
    } else {
    }
    %c0 = arith.constant 0 : index
    %c0_2 = arith.constant 0 : index
    %5 = vector.load %arg6[%c0, %c0_2] : memref<16x8xf32, #tpu.memory_space<vmem>>, vector<16x8xf32>
    %c0_3 = arith.constant 0 : index
    %c0_4 = arith.constant 0 : index
    %c0_5 = arith.constant 0 : index
    %6 = vector.load %arg4[%c0_3, %c0_4, %c0_5] : memref<1x16x16xf32, #tpu.memory_space<vmem>>, vector<1x16x16xf32>
    %7 = vector.shape_cast %6 : vector<1x16x16xf32> to vector<16x16xf32>
    %c0_6 = arith.constant 0 : index
    %c0_7 = arith.constant 0 : index
    %c0_8 = arith.constant 0 : index
    %8 = vector.load %arg5[%c0_6, %c0_7, %c0_8] : memref<1x16x8xf32, #tpu.memory_space<vmem>>, vector<1x16x8xf32>
    %9 = vector.shape_cast %8 : vector<1x16x8xf32> to vector<16x8xf32>
    %cst = arith.constant dense<0.000000e+00> : vector<16x8xf32>
    %10 = tpu.matmul %7, %9, %cst {dimension_numbers = #tpu.dot_dimension_numbers<[1], [0], [0], [1], [0, 0, 1, 1], [], []>} : vector<16x16xf32>, vector<16x8xf32>, vector<16x8xf32> -> vector<16x8xf32>
    %11 = arith.addf %5, %10 : vector<16x8xf32>
    %c0_9 = arith.constant 0 : index
    %c0_10 = arith.constant 0 : index
    %12 = vector.load %arg6[%c0_9, %c0_10] : memref<16x8xf32, #tpu.memory_space<vmem>>, vector<16x8xf32>
    tpu.vector_store %arg6[%c0_9, %c0_10], %11 {strides = array<i32>} : memref<16x8xf32, #tpu.memory_space<vmem>>, vector<16x8xf32>,
    %c0_i32_11 = arith.constant 0 : i32
    %13 = arith.cmpi eq, %arg1, %c0_i32_11 : i32
    %c1_i32 = arith.constant 1 : i32
    %14 = arith.cmpi eq, %arg2, %c1_i32 : i32
    %15 = arith.andi %13, %14 : i1
    %16 = arith.extui %15 : i1 to i32
    %c0_i32_12 = arith.constant 0 : i32
    %17 = arith.cmpi ne, %16, %c0_i32_12 : i32
    scf.if %17 {
      %c0_13 = arith.constant 0 : index
      %c0_14 = arith.constant 0 : index
      %18 = vector.load %arg6[%c0_13, %c0_14] : memref<16x8xf32, #tpu.memory_space<vmem>>, vector<16x8xf32>
      %cst_15 = arith.constant 0.000000e+00 : f32
      %19 = vector.broadcast %cst_15 : f32 to vector<16x8xf32>
      %20 = arith.maximumf %18, %19 : vector<16x8xf32>
      %c0_16 = arith.constant 0 : index
      %c0_17 = arith.constant 0 : index
      %21 = vector.load %arg6[%c0_16, %c0_17] : memref<16x8xf32, #tpu.memory_space<vmem>>, vector<16x8xf32>
      tpu.vector_store %arg6[%c0_16, %c0_17], %20 {strides = array<i32>} : memref<16x8xf32, #tpu.memory_space<vmem>>, vector<16x8xf32>,
    } else {
    }
    return
  }
  func.func @transform_0(%arg0: i32, %arg1: i32, %arg2: i32) -> (i32, i32) {
    %c0_i32 = arith.constant 0 : i32
    %c0_i32_0 = arith.constant 0 : i32
    return %arg0, %c0_i32 : i32, i32
  }
  func.func @transform_1(%arg0: i32, %arg1: i32, %arg2: i32) -> (i32, i32, i32) {
    %c0_i32 = arith.constant 0 : i32
    return %arg2, %arg0, %arg1 : i32, i32, i32
  }
  func.func @transform_2(%arg0: i32, %arg1: i32, %arg2: i32) -> (i32, i32, i32) {
    %c0_i32 = arith.constant 0 : i32
    %c0_i32_0 = arith.constant 0 : i32
    return %arg2, %arg1, %c0_i32 : i32, i32, i32
  }
  func.func @transform_3(%arg0: i32, %arg1: i32, %arg2: i32) -> (i32, i32) {
    %c0_i32 = arith.constant 0 : i32
    %c0_i32_0 = arith.constant 0 : i32
    return %arg0, %c0_i32 : i32, i32
  }
}

</mosaic_0001>

<bundles_post_ra>
// kernel: tpu_custom_call.1
= control target key start
LH: loop header
LB: loop body
LE: loop exit
PB: predicated region body
PF: predicated region fallthrough
CT: control target
= control target key end

     0   :  { %s602_s12 = smov 0   ;;  %s604_s13 = smov 0   ;;  %s677_s0 = inlined_call_operand.vmem [shape: f32[16,8], index: 0, kind: input, shape index: {}]   ;;  %s678_s1 = inlined_call_operand.vmem [shape: f32[2,16,16], index: 1, kind: input, shape index: {}]   ;;  %s679_s2 = inlined_call_operand.vmem [shape: f32[2,16,8], index: 2, kind: input, shape index: {}]   ;;  %s680_s3 = inlined_call_operand.vmem [shape: f32[16,8], index: 3, kind: output, shape index: {}]  }
   0x1   :  { %s606_s14 = smov 0  }
   0x2 LB: > { %s25_s15 = sadd.s32 1, %s576_s13  ;;  %p502_p0 = scmp.ge.s32.totalorder %s580_s14, 1  ;;  %s580_s14 = sphi %s606_s14, %s13_s14   ;;  %s576_s13 = sphi %s604_s13, %s682_s13   ;;  %s572_s12 = sphi %s602_s12, %s681_s12  }
   0x3   : > { %p26_p1 = scmp.ge.s32.totalorder %s25_s15, 2  ;;  %p196_p2 = scmp.lt.s32.totalorder %s580_s14, 3 }
   0x5   : > { %s684_s15 = smov (%p26_p1, %s25_s15), 0  ;;  %p197_p3 = pnand %p502_p0, %p196_p2 }
   0x6   : > { %p248_p4 = scmp.lt.s32.totalorder (!%p197_p3), %s572_s12, 1  ;;  %p277_p5 = scmp.eq.s32.totalorder (!%p197_p3), %s572_s12, 0 }
   0x7   : > { %200 = sbr.rel (%p197_p3) target bundleno = 255 (0xff), region = 32 }
   0xe   : > { %s249_s16 = scalar_select %p248_p4, %s572_s12, 1 }
   0xf   : > { %281 = sbr.rel (!%p277_p5) target bundleno = 22 (0x16), region = 36  ;;  %v282_v0 = vld [vmem:[%s677_s0] sm:$0xff] (%p277_p5)  ;;  %vm284_vm0 = vcmask (%p277_p5), 64512   ;;  %v283_v1 = vld [vmem:[%s677_s0 + $0x8] sm:$0xff] (%p277_p5) }
  0x10   : > { %s515_s17 = sshll.u32 %s249_s16, 4  ;;  %285 = vst.msk [vmem:[%s680_s3] sm:$0xff] (%p277_p5), %vm284_vm0, %v282_v0  ;;  %286 = vst.msk [vmem:[%s680_s3 + $0x8] sm:$0xff] (%p277_p5), %vm284_vm0, %v283_v1 }
  0x11   : > { %s258_s20 = scalar_lea.vmem %s678_s1, %s515_s17  ;;  %s268_s23 = scalar_lea.vmem %s679_s2, %s515_s17 }
  0x16 PF: > { %v291_v2 = vld [vmem:[%s268_s23] sm:$0xff]  ;;  %v292_v3 = vld [vmem:[%s268_s23 + $0x8] sm:$0xff]  ;;  %vm293_vm1 = vcmask 130048   ;;  %p380_p6 = scmp.eq.s32.totalorder %s572_s12, 1  ;;  %vm377_vm2 = vcmask 64512  }
  0x17   : > { %v289_v4 = vld [vmem:[%s258_s20] sm:$0xff]  ;;  %v530_v5 = vpack.c.bf16 %v292_v3, %v291_v2  ;;  %v290_v6 = vld [vmem:[%s258_s20 + $0x8] sm:$0xff] }
  0x18   : > { %527 = vmatprep.mubr.msk.f32.mxu0 %vm293_vm1, %v289_v4  ;;  %v288_v7 = vld [vmem:[%s680_s3 + $0x8] sm:$0xff]  ;;  %v287_v8 = vld [vmem:[%s680_s3] sm:$0xff] }
  0x19   : > { %531 = vmatprep.subr.bf16.mxu0 %v530_v5 }
  0x1a   : > { %533 = vmatpush3.bf16.msra.mxu0 %v530_v5 }
  0x1d   : > { %528 = vmatmul.mubr.msk.f32.vlgmr.msra.gmra.mrb[0].mxu0 %vm293_vm1, %v290_v6 }
  0xee   : > { %384 = sbr.rel (!%p380_p6) target bundleno = 255 (0xff), region = 40 }
  0xf0   : > { %v529_v9 = vpop.f32.mrb[0].mxu0 }
  0xf1   : > { %v376_v10 = vadd.f32 %v529_v9, %v288_v7  ;;  %v366_v11 = vpop.f32.mrb[1].mxu0 }
  0xf2   : > { %v375_v12 = vadd.f32 %v366_v11, %v287_v8 }
  0xf3   : > { %379 = vst.msk [vmem:[%s680_s3 + $0x8] sm:$0xff] %vm377_vm2, %v376_v10 }
  0xf4   : > { %378 = vst.msk [vmem:[%s680_s3] sm:$0xff] %vm377_vm2, %v375_v12 }
  0xfa   : > { %v386_v14 = vld [vmem:[%s680_s3 + $0x8] sm:$0xff] }
  0xfb   : > { %v385_v13 = vld [vmem:[%s680_s3] sm:$0xff]  ;;  %v388_v16 = vmax.f32 %v386_v14, 0.0 }
  0xfc   : > { %v387_v15 = vmax.f32 %v385_v13, 0.0 }
  0xfd   : > { %390 = vst.msk [vmem:[%s680_s3 + $0x8] sm:$0xff] %vm377_vm2, %v388_v16 }
  0xfe   : > { %389 = vst.msk [vmem:[%s680_s3] sm:$0xff] %vm377_vm2, %v387_v15 }
  0xff PF: > { %s13_s14 = sadd.s32 1, %s580_s14   ;;  %s681_s12 = smov %s576_s13 }
 0x100   : > { %p10_p7 = scmp.ge.s32.totalorder %s13_s14, 4   ;;  %s682_s13 = smov %s684_s15 }
 0x102   :  { %12 = sbr.rel (!%p10_p7) target bundleno = 2 (0x2), region = 76 }

</bundles_post_ra>
